<compile_context>
chip_gen: v5e
topology: v5e:2x2
jax: 0.10.0
libtpu: 0.0.40
codegen_flags: <defaults>
</compile_context>

<pallas_src>
import jax
import jax.numpy as jnp
from jax.experimental import pallas as pl
from jax.experimental.pallas import tpu as pltpu

# Module-defined hidden sizes (fixed by Generator.__init__)
H1, H2, H3 = 64, 128, 256

# Example dims (GAN on MNIST: latent z dim, flattened image dim)
G_INPUT_DIM = 100
G_OUTPUT_DIM = 784

BATCH = 16

LRELU_SLOPE = 0.2
LANE = 128        # lane width: pad feature dims to multiples of this
SUBLANE = 8       # sublane: pad batch to multiples of this
MAX_TILE_B = 256  # batch tile cap for large batches (fills MXU M on v6e/v7x)


def _round_up(x, m):
    return (x + m - 1) // m * m


def _leaky_relu(h):
    # f32 elementwise on the VPU.
    return jnp.where(h >= 0.0, h, LRELU_SLOPE * h)


def gen_kernel(x_ref,
               w1_ref, b1_ref, w2_ref, b2_ref,
               w3_ref, b3_ref, w4_ref, b4_ref,
               o_ref):
    # x is already bf16 and lane-padded by the wrapper.
    h = jnp.dot(x_ref[...], w1_ref[...],
                preferred_element_type=jnp.float32) + b1_ref[...]
    h = _leaky_relu(h)

    h = jnp.dot(h.astype(jnp.bfloat16), w2_ref[...],
                preferred_element_type=jnp.float32) + b2_ref[...]
    h = _leaky_relu(h)

    h = jnp.dot(h.astype(jnp.bfloat16), w3_ref[...],
                preferred_element_type=jnp.float32) + b3_ref[...]
    h = _leaky_relu(h)

    o_ref[...] = jnp.dot(h.astype(jnp.bfloat16), w4_ref[...],
                         preferred_element_type=jnp.float32) + b4_ref[...]


def generator_forward(x, params, d_out=G_OUTPUT_DIM):
    """x: (B, d_in) float32 -> (B, d_out) float32."""
    w1, b1, w2, b2, w3, b3, w4, b4 = params  # padded, transposed, bf16 weights
    B, d_in = x.shape
    d_in_p = w1.shape[0]     # 128
    d_out_p = w4.shape[1]    # 896

    # Pad + cast the input in the wrapper: bf16, lane-aligned K, sublane-aligned B.
    B_p = _round_up(B, SUBLANE)
    tile_b = min(B_p, MAX_TILE_B)
    B_p = _round_up(B_p, tile_b)
    x_p = jnp.zeros((B_p, d_in_p), jnp.bfloat16)
    x_p = x_p.at[:B, :d_in].set(x.astype(jnp.bfloat16))

    grid = (pl.cdiv(B_p, tile_b),)   # == (1,) at the example batch -> single step

    def row_map(i):
        return (i, 0)

    def const_map(i):
        return (0, 0)

    # Weights/biases: full-array blocks with constant index_map -> VMEM-resident
    # across the batch grid (re-DMA skipped on unchanged block index).
    weight_specs = [pl.BlockSpec(p.shape, const_map)
                    for p in (w1, b1, w2, b2, w3, b3, w4, b4)]

    out_p = pl.pallas_call(
        gen_kernel,
        out_shape=jax.ShapeDtypeStruct((B_p, d_out_p), jnp.float32),
        grid=grid,
        in_specs=[pl.BlockSpec((tile_b, d_in_p), row_map)] + weight_specs,
        out_specs=pl.BlockSpec((tile_b, d_out_p), row_map),
        compiler_params=pltpu.CompilerParams(
            dimension_semantics=("parallel",)),
    )(x_p, w1, b1, w2, b2, w3, b3, w4, b4)

    return out_p[:B, :d_out]


def init_params(key, d_in, d_out):
    """nn.Linear-style init: U(-1/sqrt(fan_in), 1/sqrt(fan_in)) over the TRUE
    (unpadded) fan-in/out, then zero-padded to lane-aligned shapes, stored
    transposed as (in_features, out_features).  Weights bf16, biases f32 (1, N).
    Zero padding is exact: padded rows/cols contribute nothing."""
    dims = [(d_in, H1), (H1, H2), (H2, H3), (H3, d_out)]
    params = []
    for fan_in, fan_out in dims:
        key, kw, kb = jax.random.split(key, 3)
        bound = 1.0 / float(fan_in) ** 0.5
        w = jax.random.uniform(kw, (fan_in, fan_out), jnp.float32, -bound, bound)
        b = jax.random.uniform(kb, (1, fan_out), jnp.float32, -bound, bound)
        in_p = _round_up(fan_in, LANE)
        out_p = _round_up(fan_out, LANE)
        w_p = jnp.zeros((in_p, out_p), jnp.float32).at[:fan_in, :fan_out].set(w)
        b_p = jnp.zeros((1, out_p), jnp.float32).at[:, :fan_out].set(b)
        params += [w_p.astype(jnp.bfloat16), b_p]
    return params


def _reference(x, params, d_out=G_OUTPUT_DIM):
    """Pure-JAX reference of Generator.forward using the same padded bf16 weights."""
    w1, b1, w2, b2, w3, b3, w4, b4 = params
    B, d_in = x.shape
    h = jnp.zeros((B, w1.shape[0]), jnp.float32).at[:, :d_in].set(x)
    for w, b, act in ((w1, b1, True), (w2, b2, True), (w3, b3, True), (w4, b4, False)):
        h = jnp.dot(h.astype(jnp.bfloat16), w,
                    preferred_element_type=jnp.float32) + b
        if act:
            h = jnp.where(h >= 0.0, h, LRELU_SLOPE * h)
    return h[:, :d_out]


if __name__ == "__main__":
    key = jax.random.PRNGKey(0)
    key, kx, kp = jax.random.split(key, 3)

    x = jax.random.normal(kx, (BATCH, G_INPUT_DIM), dtype=jnp.float32)
    params = init_params(kp, G_INPUT_DIM, G_OUTPUT_DIM)

    out = generator_forward(x, params)
    out = jax.block_until_ready(out)

    assert out.shape == (BATCH, G_OUTPUT_DIM)
    assert bool(jnp.all(jnp.isfinite(out)))

    ref = _reference(x, params)
    assert bool(jnp.allclose(out, ref, atol=1e-2, rtol=1e-2))

    print("KERNEL_OK")
</pallas_src>

<mosaic_0001>
module attributes {stable_mosaic.version = 11 : i64} {
  func.func @gen_kernel(%arg0: i32, %arg1: memref<16x128xbf16, #tpu.memory_space<vmem>>, %arg2: memref<128x128xbf16, #tpu.memory_space<vmem>>, %arg3: memref<1x128xf32, #tpu.memory_space<vmem>>, %arg4: memref<128x128xbf16, #tpu.memory_space<vmem>>, %arg5: memref<1x128xf32, #tpu.memory_space<vmem>>, %arg6: memref<128x256xbf16, #tpu.memory_space<vmem>>, %arg7: memref<1x256xf32, #tpu.memory_space<vmem>>, %arg8: memref<256x896xbf16, #tpu.memory_space<vmem>>, %arg9: memref<1x896xf32, #tpu.memory_space<vmem>>, %arg10: memref<16x896xf32, #tpu.memory_space<vmem>>) attributes {dimension_semantics = [#tpu.dimension_semantics<parallel>], iteration_bounds = array<i64: 1>, scalar_prefetch = 0 : i64, scratch_operands = 0 : i64, tpu.core_type = #tpu.core_type<tc>, window_params = [{transform_indices = @transform_0, window_bounds = array<i64: 16, 128>}, {pipeline_mode = #tpu.pipeline_mode<synchronous>, transform_indices = @transform_1, window_bounds = array<i64: 128, 128>}, {pipeline_mode = #tpu.pipeline_mode<synchronous>, transform_indices = @transform_2, window_bounds = array<i64: 1, 128>}, {pipeline_mode = #tpu.pipeline_mode<synchronous>, transform_indices = @transform_3, window_bounds = array<i64: 128, 128>}, {pipeline_mode = #tpu.pipeline_mode<synchronous>, transform_indices = @transform_4, window_bounds = array<i64: 1, 128>}, {pipeline_mode = #tpu.pipeline_mode<synchronous>, transform_indices = @transform_5, window_bounds = array<i64: 128, 256>}, {pipeline_mode = #tpu.pipeline_mode<synchronous>, transform_indices = @transform_6, window_bounds = array<i64: 1, 256>}, {pipeline_mode = #tpu.pipeline_mode<synchronous>, transform_indices = @transform_7, window_bounds = array<i64: 256, 896>}, {pipeline_mode = #tpu.pipeline_mode<synchronous>, transform_indices = @transform_8, window_bounds = array<i64: 1, 896>}, {transform_indices = @transform_9, window_bounds = array<i64: 16, 896>}]} {
    %c0 = arith.constant 0 : index
    %c0_0 = arith.constant 0 : index
    %0 = vector.load %arg1[%c0, %c0_0] : memref<16x128xbf16, #tpu.memory_space<vmem>>, vector<16x128xbf16>
    %c0_1 = arith.constant 0 : index
    %c0_2 = arith.constant 0 : index
    %1 = vector.load %arg2[%c0_1, %c0_2] : memref<128x128xbf16, #tpu.memory_space<vmem>>, vector<128x128xbf16>
    %cst = arith.constant dense<0.000000e+00> : vector<16x128xf32>
    %2 = tpu.matmul %0, %1, %cst {dimension_numbers = #tpu.dot_dimension_numbers<[1], [0], [0], [1], [0, 0, 1, 1], [], []>} : vector<16x128xbf16>, vector<128x128xbf16>, vector<16x128xf32> -> vector<16x128xf32>
    %c0_3 = arith.constant 0 : index
    %c0_4 = arith.constant 0 : index
    %3 = vector.load %arg3[%c0_3, %c0_4] : memref<1x128xf32, #tpu.memory_space<vmem>>, vector<1x128xf32>
    %4 = vector.broadcast %3 : vector<1x128xf32> to vector<16x128xf32>
    %5 = arith.addf %2, %4 : vector<16x128xf32>
    %cst_5 = arith.constant 0.000000e+00 : f32
    %6 = vector.broadcast %cst_5 : f32 to vector<16x128xf32>
    %7 = arith.cmpf oge, %5, %6 : vector<16x128xf32>
    %cst_6 = arith.constant 2.000000e-01 : f32
    %8 = vector.broadcast %cst_6 : f32 to vector<16x128xf32>
    %9 = arith.mulf %8, %5 : vector<16x128xf32>
    %10 = arith.select %7, %5, %9 : vector<16x128xi1>, vector<16x128xf32>
    %11 = arith.truncf %10 : vector<16x128xf32> to vector<16x128xbf16>
    %c0_7 = arith.constant 0 : index
    %c0_8 = arith.constant 0 : index
    %12 = vector.load %arg4[%c0_7, %c0_8] : memref<128x128xbf16, #tpu.memory_space<vmem>>, vector<128x128xbf16>
    %cst_9 = arith.constant dense<0.000000e+00> : vector<16x128xf32>
    %13 = tpu.matmul %11, %12, %cst_9 {dimension_numbers = #tpu.dot_dimension_numbers<[1], [0], [0], [1], [0, 0, 1, 1], [], []>} : vector<16x128xbf16>, vector<128x128xbf16>, vector<16x128xf32> -> vector<16x128xf32>
    %c0_10 = arith.constant 0 : index
    %c0_11 = arith.constant 0 : index
    %14 = vector.load %arg5[%c0_10, %c0_11] : memref<1x128xf32, #tpu.memory_space<vmem>>, vector<1x128xf32>
    %15 = vector.broadcast %14 : vector<1x128xf32> to vector<16x128xf32>
    %16 = arith.addf %13, %15 : vector<16x128xf32>
    %cst_12 = arith.constant 0.000000e+00 : f32
    %17 = vector.broadcast %cst_12 : f32 to vector<16x128xf32>
    %18 = arith.cmpf oge, %16, %17 : vector<16x128xf32>
    %cst_13 = arith.constant 2.000000e-01 : f32
    %19 = vector.broadcast %cst_13 : f32 to vector<16x128xf32>
    %20 = arith.mulf %19, %16 : vector<16x128xf32>
    %21 = arith.select %18, %16, %20 : vector<16x128xi1>, vector<16x128xf32>
    %22 = arith.truncf %21 : vector<16x128xf32> to vector<16x128xbf16>
    %c0_14 = arith.constant 0 : index
    %c0_15 = arith.constant 0 : index
    %23 = vector.load %arg6[%c0_14, %c0_15] : memref<128x256xbf16, #tpu.memory_space<vmem>>, vector<128x256xbf16>
    %cst_16 = arith.constant dense<0.000000e+00> : vector<16x256xf32>
    %24 = tpu.matmul %22, %23, %cst_16 {dimension_numbers = #tpu.dot_dimension_numbers<[1], [0], [0], [1], [0, 0, 1, 1], [], []>} : vector<16x128xbf16>, vector<128x256xbf16>, vector<16x256xf32> -> vector<16x256xf32>
    %c0_17 = arith.constant 0 : index
    %c0_18 = arith.constant 0 : index
    %25 = vector.load %arg7[%c0_17, %c0_18] : memref<1x256xf32, #tpu.memory_space<vmem>>, vector<1x256xf32>
    %26 = vector.broadcast %25 : vector<1x256xf32> to vector<16x256xf32>
    %27 = arith.addf %24, %26 : vector<16x256xf32>
    %cst_19 = arith.constant 0.000000e+00 : f32
    %28 = vector.broadcast %cst_19 : f32 to vector<16x256xf32>
    %29 = arith.cmpf oge, %27, %28 : vector<16x256xf32>
    %cst_20 = arith.constant 2.000000e-01 : f32
    %30 = vector.broadcast %cst_20 : f32 to vector<16x256xf32>
    %31 = arith.mulf %30, %27 : vector<16x256xf32>
    %32 = arith.select %29, %27, %31 : vector<16x256xi1>, vector<16x256xf32>
    %33 = arith.truncf %32 : vector<16x256xf32> to vector<16x256xbf16>
    %c0_21 = arith.constant 0 : index
    %c0_22 = arith.constant 0 : index
    %34 = vector.load %arg8[%c0_21, %c0_22] : memref<256x896xbf16, #tpu.memory_space<vmem>>, vector<256x896xbf16>
    %cst_23 = arith.constant dense<0.000000e+00> : vector<16x896xf32>
    %35 = tpu.matmul %33, %34, %cst_23 {dimension_numbers = #tpu.dot_dimension_numbers<[1], [0], [0], [1], [0, 0, 1, 1], [], []>} : vector<16x256xbf16>, vector<256x896xbf16>, vector<16x896xf32> -> vector<16x896xf32>
    %c0_24 = arith.constant 0 : index
    %c0_25 = arith.constant 0 : index
    %36 = vector.load %arg9[%c0_24, %c0_25] : memref<1x896xf32, #tpu.memory_space<vmem>>, vector<1x896xf32>
    %37 = vector.broadcast %36 : vector<1x896xf32> to vector<16x896xf32>
    %38 = arith.addf %35, %37 : vector<16x896xf32>
    %c0_26 = arith.constant 0 : index
    %c0_27 = arith.constant 0 : index
    %39 = vector.load %arg10[%c0_26, %c0_27] : memref<16x896xf32, #tpu.memory_space<vmem>>, vector<16x896xf32>
    tpu.vector_store %arg10[%c0_26, %c0_27], %38 {strides = array<i32>} : memref<16x896xf32, #tpu.memory_space<vmem>>, vector<16x896xf32>,
    return
  }
  func.func @transform_0(%arg0: i32) -> (i32, i32) {
    %c0_i32 = arith.constant 0 : i32
    %c0_i32_0 = arith.constant 0 : i32
    return %arg0, %c0_i32 : i32, i32
  }
  func.func @transform_1(%arg0: i32) -> (i32, i32) {
    %c0_i32 = arith.constant 0 : i32
    %c0_i32_0 = arith.constant 0 : i32
    %c0_i32_1 = arith.constant 0 : i32
    return %c0_i32, %c0_i32_0 : i32, i32
  }
  func.func @transform_2(%arg0: i32) -> (i32, i32) {
    %c0_i32 = arith.constant 0 : i32
    %c0_i32_0 = arith.constant 0 : i32
    %c0_i32_1 = arith.constant 0 : i32
    return %c0_i32, %c0_i32_0 : i32, i32
  }
  func.func @transform_3(%arg0: i32) -> (i32, i32) {
    %c0_i32 = arith.constant 0 : i32
    %c0_i32_0 = arith.constant 0 : i32
    %c0_i32_1 = arith.constant 0 : i32
    return %c0_i32, %c0_i32_0 : i32, i32
  }
  func.func @transform_4(%arg0: i32) -> (i32, i32) {
    %c0_i32 = arith.constant 0 : i32
    %c0_i32_0 = arith.constant 0 : i32
    %c0_i32_1 = arith.constant 0 : i32
    return %c0_i32, %c0_i32_0 : i32, i32
  }
  func.func @transform_5(%arg0: i32) -> (i32, i32) {
    %c0_i32 = arith.constant 0 : i32
    %c0_i32_0 = arith.constant 0 : i32
    %c0_i32_1 = arith.constant 0 : i32
    return %c0_i32, %c0_i32_0 : i32, i32
  }
  func.func @transform_6(%arg0: i32) -> (i32, i32) {
    %c0_i32 = arith.constant 0 : i32
    %c0_i32_0 = arith.constant 0 : i32
    %c0_i32_1 = arith.constant 0 : i32
    return %c0_i32, %c0_i32_0 : i32, i32
  }
  func.func @transform_7(%arg0: i32) -> (i32, i32) {
    %c0_i32 = arith.constant 0 : i32
    %c0_i32_0 = arith.constant 0 : i32
    %c0_i32_1 = arith.constant 0 : i32
    return %c0_i32, %c0_i32_0 : i32, i32
  }
  func.func @transform_8(%arg0: i32) -> (i32, i32) {
    %c0_i32 = arith.constant 0 : i32
    %c0_i32_0 = arith.constant 0 : i32
    %c0_i32_1 = arith.constant 0 : i32
    return %c0_i32, %c0_i32_0 : i32, i32
  }
  func.func @transform_9(%arg0: i32) -> (i32, i32) {
    %c0_i32 = arith.constant 0 : i32
    %c0_i32_0 = arith.constant 0 : i32
    return %arg0, %c0_i32 : i32, i32
  }
}

</mosaic_0001>

<bundles_post_ra>
// kernel: tpu_custom_call.1
= control target key start
LH: loop header
LB: loop body
LE: loop exit
PB: predicated region body
PF: predicated region fallthrough
CT: control target
= control target key end

     0   :  { %14 = vsyncpa [#allocation3], 0  ;;  %s2532_s0 = inlined_call_operand.hbm [shape: bf16[16,128], index: 0, kind: input, shape index: {}]   ;;  %s2533_s1 = inlined_call_operand.hbm [shape: bf16[128,128], index: 1, kind: input, shape index: {}]   ;;  %s2534_s2 = inlined_call_operand.hbm [shape: f32[1,128], index: 2, kind: input, shape index: {}]   ;;  %s2535_s3 = inlined_call_operand.hbm [shape: bf16[128,128], index: 3, kind: input, shape index: {}]   ;;  %s2536_s4 = inlined_call_operand.hbm [shape: f32[1,128], index: 4, kind: input, shape index: {}]   ;;  %s2537_s5 = inlined_call_operand.hbm [shape: bf16[128,256], index: 5, kind: input, shape index: {}]   ;;  %s2538_s6 = inlined_call_operand.hbm [shape: f32[1,256], index: 6, kind: input, shape index: {}]   ;;  %s2539_s7 = inlined_call_operand.hbm [shape: bf16[256,896], index: 7, kind: input, shape index: {}]   ;;  %s2540_s8 = inlined_call_operand.vmem [shape: f32[1,896], index: 8, kind: input, shape index: {}]   ;;  %s2541_s9 = inlined_call_operand.hbm [shape: f32[16,896], index: 9, kind: output, shape index: {}]  }
   0x1   :  { %15 = vsyncpa [#allocation6], 0 }
   0x2   :  { %16 = vsyncpa [#allocation9], 0 }
   0x3   :  { %17 = vsyncpa [#allocation12], 0 }
   0x4   :  { %18 = vsyncpa [#allocation15], 0 }
   0x5   :  { %19 = vsyncpa [#allocation4], 0  ;;  %s37_s11 = sshll.u32 %s2533_s1, 4  ;;  %s2407_s12 = smov [#allocation5]   ;;  %s38_s11 = int_to_ptr.hbm [resolvable:$true] %s37_s11 }
   0x6   :  { %s39_s13 = sshll.u32 %s2407_s12, 4  ;;  %s61_s16 = sshll.u32 %s2535_s3, 4  ;;  %s40_s13 = int_to_ptr.vmem [resolvable:$true] %s39_s13  ;;  %s62_s16 = int_to_ptr.hbm [resolvable:$true] %s61_s16 }
   0x7   :  { %s2408_s17 = smov 64   ;;  %s2409_s18 = smov 4  }
   0x8   :  { %45 = dma.hbm_to_vmem [thread:$0]  %s38_s11, 1024, %s40_s13, [#allocation6], %s2408_s17, %s2408_s17, %s2409_s18  }
   0x9   :  { %s2410_s19 = smov [#allocation8]   ;;  %s85_s23 = sshll.u32 %s2537_s5, 4  ;;  %s86_s23 = int_to_ptr.hbm [resolvable:$true] %s85_s23 }
   0xa   :  { %s63_s20 = sshll.u32 %s2410_s19, 4  ;;  %s2411_s1 = smov [#allocation11]   ;;  %s64_s20 = int_to_ptr.vmem [resolvable:$true] %s63_s20 }
   0xb   :  { %69 = dma.hbm_to_vmem [thread:$0]  %s62_s16, 1024, %s64_s20, [#allocation9], %s2408_s17, %s2408_s17, %s2409_s18  }
   0xc   :  { %s87_s24 = sshll.u32 %s2411_s1, 4  ;;  %s24_s3 = sshll.u32 %s2532_s0, 4  ;;  %s88_s24 = int_to_ptr.vmem [resolvable:$true] %s87_s24  ;;  %s25_s3 = int_to_ptr.hbm [resolvable:$true] %s24_s3 }
   0xd   :  { %s2412_s27 = smov 128   ;;  %s2413_s28 = smov 8  }
   0xe   :  { %93 = dma.hbm_to_vmem [thread:$0]  %s86_s23, 2048, %s88_s24, [#allocation12], %s2412_s27, %s2412_s27, %s2413_s28  }
   0xf   :  { %s2414_s29 = smov [#allocation2]   ;;  %s51_s5 = sshll.u32 %s2534_s2, 4  ;;  %s52_s5 = int_to_ptr.hbm [resolvable:$true] %s51_s5 }
  0x10   :  { %s26_s30 = sshll.u32 %s2414_s29, 4  ;;  %s75_s14 = sshll.u32 %s2536_s4, 4  ;;  %s27_s30 = int_to_ptr.vmem [resolvable:$true] %s26_s30  ;;  %s76_s14 = int_to_ptr.hbm [resolvable:$true] %s75_s14 }
  0x11   :  { %32 = dma.hbm_to_vmem [thread:$0]  %s25_s3, 128, %s27_s30, [#allocation3], %s2408_s17, %s2408_s17, %s2409_s18  }
  0x12   :  { %s2415_s15 = smov [#allocation7]   ;;  %s2416_s0 = smov [#allocation10]  }
  0x13   :  { %s53_s16 = sshll.u32 %s2415_s15, 4  ;;  %s77_s19 = sshll.u32 %s2416_s0, 4  ;;  %s54_s16 = int_to_ptr.vmem [resolvable:$true] %s53_s16  ;;  %s78_s19 = int_to_ptr.vmem [resolvable:$true] %s77_s19 }
  0x14   :  { %56 = dma.hbm_to_vmem [thread:$0]  %s52_s5, 16, %s54_s16, [#allocation6]  }
  0x15   :  { %s99_s22 = sshll.u32 %s2538_s6, 4  ;;  %s109_s18 = sshll.u32 %s2539_s7, 4  ;;  %s100_s22 = int_to_ptr.hbm [resolvable:$true] %s99_s22  ;;  %s110_s18 = int_to_ptr.hbm [resolvable:$true] %s109_s18 }
  0x16   :  { %80 = dma.hbm_to_vmem [thread:$0]  %s76_s14, 16, %s78_s19, [#allocation9]  }
  0x17   :  { %s2417_s23 = smov [#allocation13]   ;;  %s2418_s1 = smov [#allocation14]  }
  0x18   :  { %s101_s4 = sshll.u32 %s2417_s23, 4  ;;  %s111_s24 = sshll.u32 %s2418_s1, 4  ;;  %s102_s4 = int_to_ptr.vmem [resolvable:$true] %s101_s4  ;;  %s112_s24 = int_to_ptr.vmem [resolvable:$true] %s111_s24 }
  0x19   :  { %104 = dma.hbm_to_vmem [thread:$0]  %s100_s22, 32, %s102_s4, [#allocation12]  }
  0x1a   :  { %s2419_s25 = smov 448   ;;  %s2420_s26 = smov 28  }
  0x1b   :  { %117 = dma.hbm_to_vmem [thread:$0]  %s110_s18, 14336, %s112_s24, [#allocation15], %s2419_s25, %s2419_s25, %s2420_s26  }
  0x1c   :  { %2395 = dma.done.wait [#allocation3], 128  }
  0x1d   :  { %2396 = vsyncadd [#allocation3], 4294967168 }
  0x1e   :  { %2397 = dma.done.wait [#allocation6], 1040  }
  0x1f   :  { %2398 = vsyncadd [#allocation6], 4294966256 }
  0x20   :  { %2399 = dma.done.wait [#allocation9], 1040  }
  0x21   :  { %2400 = vsyncadd [#allocation9], 4294966256 }
  0x22   :  { %2401 = dma.done.wait [#allocation12], 2080  }
  0x23   :  { %2402 = vsyncadd [#allocation12], 4294965216 }
  0x24   :  { %2403 = dma.done.wait [#allocation15], 14336  }
  0x25   :  { %2404 = vsyncadd [#allocation15], 4294952960  ;;  %v2023_v0 = vld [vmem:[#allocation5 + $0x38] sm:$0xff]  ;;  %v2022_v1 = vld [vmem:[#allocation5 + $0x30] sm:$0xff]  ;;  %s1418_s29 = sshll.u32 %s2541_s9, 4  ;;  %s2422_s30 = smov 896   ;;  %s1419_s29 = int_to_ptr.hbm [resolvable:$true] %s1418_s29 }
  0x26   :  { %228 = vmatpush.bf16.msra.mxu0 %v2023_v0  ;;  %v2031_v2 = vld [vmem:[#allocation8 + $0x38] sm:$0xff]  ;;  %v2030_v3 = vld [vmem:[#allocation8 + $0x30] sm:$0xff]  ;;  %v2021_v4 = vld [vmem:[#allocation5 + $0x28] sm:$0xff]  ;;  %s2423_s10 = smov 56  }
  0x27   :  { %317 = vmatpush.bf16.msra.mxu1 %v2031_v2  ;;  %v2029_v5 = vld [vmem:[#allocation8 + $0x28] sm:$0xff]  ;;  %v2020_v6 = vld [vmem:[#allocation5 + $0x20] sm:$0xff]  ;;  %v2019_v8 = vld [vmem:[#allocation5 + $0x18] sm:$0xff] }
  0x28   :  { %v2028_v7 = vld [vmem:[#allocation8 + $0x20] sm:$0xff]  ;;  %v2018_v9 = vld [vmem:[#allocation5 + $0x10] sm:$0xff]  ;;  %v2015_v12 = vld [vmem:[#allocation2] sm:$0xff] }
  0x29   :  { %v2017_v10 = vld [vmem:[#allocation5 + $0x8] sm:$0xff]  ;;  %v2016_v11 = vld [vmem:[#allocation5] sm:$0xff]  ;;  %v2026_v14 = vld [vmem:[#allocation8 + $0x10] sm:$0xff] }
  0x2a   :  { %229 = vmatpush.bf16.msra.mxu0 %v2022_v1  ;;  %v2027_v13 = vld [vmem:[#allocation8 + $0x18] sm:$0xff]  ;;  %v2025_v15 = vld [vmem:[#allocation8 + $0x8] sm:$0xff]  ;;  %v2024_v16 = vld [vmem:[#allocation8] sm:$0xff] }
  0x2b   :  { %318 = vmatpush.bf16.msra.mxu1 %v2030_v3  ;;  %v1561_v17 = vld [vmem:[#allocation11 + $0x70] sm:$0xf]  ;;  %v2047_v18 = vld [vmem:[#allocation11 + $0x74] sm:$0xf0]  ;;  %v2046_v19 = vld [vmem:[#allocation11 + $0x74] sm:$0xf] }
  0x2c   :  { %v1562_v20 = vor.u32 %v2047_v18, %v1561_v17  ;;  %v1563_v21 = vld [vmem:[#allocation11 + $0x78] sm:$0xf0]  ;;  %v1553_v22 = vld [vmem:[#allocation11 + $0x60] sm:$0xf]  ;;  %v2045_v23 = vld [vmem:[#allocation11 + $0x64] sm:$0xf0] }
  0x2d   :  { %v1566_v24 = vor.u32 %v2046_v19, %v1563_v21  ;;  %v2044_v25 = vld [vmem:[#allocation11 + $0x64] sm:$0xf]  ;;  %v1555_v26 = vld [vmem:[#allocation11 + $0x68] sm:$0xf0]  ;;  %v1554_v27 = vor.u32 %v2045_v23, %v1553_v22  ;;  %v1545_v29 = vld [vmem:[#allocation11 + $0x50] sm:$0xf] }
  0x2e   :  { %230 = vmatpush.bf16.msra.mxu0 %v2021_v4  ;;  %440 = vmatpush.bf16.msra.mxu2 %v1562_v20  ;;  %v1558_v28 = vor.u32 %v2044_v25, %v1555_v26  ;;  %v2043_v30 = vld [vmem:[#allocation11 + $0x54] sm:$0xf0]  ;;  %v2042_v31 = vld [vmem:[#allocation11 + $0x54] sm:$0xf]  ;;  %v1547_v32 = vld [vmem:[#allocation11 + $0x58] sm:$0xf0] }
  0x2f   :  { %319 = vmatpush.bf16.msra.mxu1 %v2029_v5  ;;  %454 = vmatpush.bf16.msra.mxu3 %v1566_v24  ;;  %v1546_v33 = vor.u32 %v2043_v30, %v1545_v29  ;;  %v1550_v34 = vor.u32 %v2042_v31, %v1547_v32  ;;  %v1537_v35 = vld [vmem:[#allocation11 + $0x40] sm:$0xf]  ;;  %v2041_v36 = vld [vmem:[#allocation11 + $0x44] sm:$0xf0]  ;;  %v2040_v37 = vld [vmem:[#allocation11 + $0x44] sm:$0xf] }
  0x30   :  { %v1539_v38 = vld [vmem:[#allocation11 + $0x48] sm:$0xf0]  ;;  %v1538_v39 = vor.u32 %v2041_v36, %v1537_v35  ;;  %v2177_v42 = vld [vmem:[#allocation7] ss:$0 sm:$0xff]  ;;  %v1529_v51 = vld [vmem:[#allocation11 + $0x30] sm:$0xf] }
  0x31   :  { %v1542_v40 = vor.u32 %v2040_v37, %v1539_v38  ;;  %v2039_v52 = vld [vmem:[#allocation11 + $0x34] sm:$0xf0]  ;;  %v2038_v53 = vld [vmem:[#allocation11 + $0x34] sm:$0xf]  ;;  %v1531_v55 = vld [vmem:[#allocation11 + $0x38] sm:$0xf0] }
  0x32   :  { %231 = vmatpush.bf16.msra.mxu0 %v2020_v6  ;;  %441 = vmatpush.bf16.msra.mxu2 %v1554_v27  ;;  %v1530_v54 = vor.u32 %v2039_v52, %v1529_v51  ;;  %v1534_v56 = vor.u32 %v2038_v53, %v1531_v55  ;;  %v1521_v57 = vld [vmem:[#allocation11 + $0x20] sm:$0xf]  ;;  %v2037_v58 = vld [vmem:[#allocation11 + $0x24] sm:$0xf0]  ;;  %v2036_v59 = vld [vmem:[#allocation11 + $0x24] sm:$0xf] }
  0x33   :  { %320 = vmatpush.bf16.msra.mxu1 %v2028_v7  ;;  %455 = vmatpush.bf16.msra.mxu3 %v1558_v28  ;;  %v1522_v60 = vor.u32 %v2037_v58, %v1521_v57  ;;  %v1523_v61 = vld [vmem:[#allocation11 + $0x28] sm:$0xf0]  ;;  %v1513_v63 = vld [vmem:[#allocation11 + $0x10] sm:$0xf]  ;;  %v2035_v0 = vld [vmem:[#allocation11 + $0x14] sm:$0xf0] }
  0x34   :  { %v1526_v62 = vor.u32 %v2036_v59, %v1523_v61  ;;  %v2034_v1 = vld [vmem:[#allocation11 + $0x14] sm:$0xf]  ;;  %v1514_v2 = vor.u32 %v2035_v0, %v1513_v63  ;;  %v1515_v3 = vld [vmem:[#allocation11 + $0x18] sm:$0xf0]  ;;  %v1505_v5 = vld [vmem:[#allocation11] sm:$0xf] }
  0x35   :  { %v1518_v4 = vor.u32 %v2034_v1, %v1515_v3  ;;  %v2033_v6 = vld [vmem:[#allocation11 + $0x4] sm:$0xf0]  ;;  %v2032_v7 = vld [vmem:[#allocation11 + $0x4] sm:$0xf]  ;;  %v2153_v20 = vld [vmem:[#allocation14 + $0x34c] sm:$0xf] }
  0x36   :  { %232 = vmatpush.bf16.msra.mxu0 %v2019_v8  ;;  %442 = vmatpush.bf16.msra.mxu2 %v1546_v33  ;;  %v1506_v8 = vor.u32 %v2033_v6, %v1505_v5  ;;  %v1767_v17 = vld [vmem:[#allocation14 + $0x1a4] sm:$0xf0]  ;;  %v1737_v22 = vld [vmem:[#allocation14 + $0x150] sm:$0xf]  ;;  %v2093_v24 = vld [vmem:[#allocation14 + $0x168] sm:$0xf0] }
  0x37   :  { %321 = vmatpush.bf16.msra.mxu1 %v2027_v13  ;;  %456 = vmatpush.bf16.msra.mxu3 %v1550_v34  ;;  %v1989_v13 = vld [vmem:[#allocation14 + $0x348] sm:$0xf]  ;;  %v1961_v25 = vld [vmem:[#allocation14 + $0x310] sm:$0xf]  ;;  %v2149_v26 = vld [vmem:[#allocation14 + $0x328] sm:$0xf0]  ;;  %v1738_v27 = vor.u32 %v2093_v24, %v1737_v22 }
  0x38   :  { %v1991_v21 = vld [vmem:[#allocation14 + $0x364] sm:$0xf0]  ;;  %v1962_v28 = vor.u32 %v2149_v26, %v1961_v25  ;;  %v2090_v29 = vld [vmem:[#allocation14 + $0x154] sm:$0xf]  ;;  %v1739_v30 = vld [vmem:[#allocation14 + $0x16c] sm:$0xf0] }
  0x39   :  { %v1994_v23 = vor.u32 %v2153_v20, %v1991_v21  ;;  %v2146_v31 = vld [vmem:[#allocation14 + $0x314] sm:$0xf]  ;;  %v1742_v32 = vor.u32 %v2090_v29, %v1739_v30  ;;  %v1963_v33 = vld [vmem:[#allocation14 + $0x32c] sm:$0xf0]  ;;  %v1709_v34 = vld [vmem:[#allocation14 + $0x118] sm:$0xf] }
  0x3a   :  { %233 = vmatpush.bf16.msra.mxu0 %v2018_v9  ;;  %443 = vmatpush.bf16.msra.mxu2 %v1538_v39  ;;  %v1507_v9 = vld [vmem:[#allocation11 + $0x8] sm:$0xf0]  ;;  %v2086_v35 = vld [vmem:[#allocation14 + $0x130] sm:$0xf0]  ;;  %v1966_v36 = vor.u32 %v2146_v31, %v1963_v33  ;;  %v1933_v37 = vld [vmem:[#allocation14 + $0x2d8] sm:$0xf] }
  0x3b   :  { %322 = vmatpush.bf16.msra.mxu1 %v2026_v14  ;;  %457 = vmatpush.bf16.msra.mxu3 %v1542_v40  ;;  %v2142_v38 = vld [vmem:[#allocation14 + $0x2f0] sm:$0xf0]  ;;  %v2083_v39 = vld [vmem:[#allocation14 + $0x11c] sm:$0xf]  ;;  %v1710_v40 = vor.u32 %v2086_v35, %v1709_v34  ;;  %v2076_v51 = vld [vmem:[#allocation14 + $0xe4] sm:$0xf] }
  0x3c   :  { %v1683_v52 = vld [vmem:[#allocation14 + $0xfc] sm:$0xf0]  ;;  %v2132_v53 = vld [vmem:[#allocation14 + $0x2a4] sm:$0xf]  ;;  %v1653_v58 = vld [vmem:[#allocation14 + $0xa8] sm:$0xf] }
  0x3d   :  { %v1686_v57 = vor.u32 %v2076_v51, %v1683_v52  ;;  %v2072_v59 = vld [vmem:[#allocation14 + $0xc0] sm:$0xf0]  ;;  %v2069_v63 = vld [vmem:[#allocation14 + $0xac] sm:$0xf]  ;;  %v1655_v0 = vld [vmem:[#allocation14 + $0xc4] sm:$0xf0] }
  0x3e   :  { %234 = vmatpush.bf16.msra.mxu0 %v2017_v10  ;;  %444 = vmatpush.bf16.msra.mxu2 %v1530_v54  ;;  %v1510_v10 = vor.u32 %v2032_v7, %v1507_v9  ;;  %v1907_v54 = vld [vmem:[#allocation14 + $0x2bc] sm:$0xf0]  ;;  %v2125_v1 = vld [vmem:[#allocation14 + $0x26c] sm:$0xf]  ;;  %v2178_v3 = vld [vmem:[#allocation10] ss:$0 sm:$0xff]  ;;  %v1658_v7 = vor.u32 %v2069_v63, %v1655_v0 }
  0x3f   :  { %323 = vmatpush.bf16.msra.mxu1 %v2025_v15  ;;  %458 = vmatpush.bf16.msra.mxu3 %v1534_v56  ;;  %v2156_v15 = vld [vmem:[#allocation14 + $0x360] sm:$0xf0]  ;;  %v1910_v61 = vor.u32 %v2132_v53, %v1907_v54  ;;  %v2065_v9 = vld [vmem:[#allocation14 + $0x88] sm:$0xf0]  ;;  %v1597_v21 = vld [vmem:[#allocation14 + $0x38] sm:$0xf] }
  0x40   :  { %v1990_v18 = vor.u32 %v2156_v15, %v1989_v13  ;;  %v2062_v13 = vld [vmem:[#allocation14 + $0x74] sm:$0xf]  ;;  %v2055_v26 = vld [vmem:[#allocation14 + $0x3c] sm:$0xf]  ;;  %v1823_v29 = vld [vmem:[#allocation14 + $0x214] sm:$0xf0] }
  0x41   :  { %v2118_v15 = vld [vmem:[#allocation14 + $0x234] sm:$0xf]  ;;  %v1775_v52 = vld [vmem:[#allocation14 + $0x1ac] sm:$0xf0]  ;;  %v1745_v0 = vld [vmem:[#allocation14 + $0x158] sm:$0xf] }
  0x42   :  { %235 = vmatpush.bf16.msra.mxu0 %v2016_v11  ;;  %445 = vmatpush.bf16.msra.mxu2 %v1522_v60  ;;  %v1765_v11 = vld [vmem:[#allocation14 + $0x188] sm:$0xf]  ;;  %v2058_v22 = vld [vmem:[#allocation14 + $0x50] sm:$0xf0] }
  0x43   :  { %324 = vmatpush.bf16.msra.mxu1 %v2024_v16  ;;  %459 = vmatpush.bf16.msra.mxu3 %v1526_v62  ;;  %v2097_v16 = vld [vmem:[#allocation14 + $0x18c] sm:$0xf]  ;;  %v1877_v60 = vld [vmem:[#allocation14 + $0x268] sm:$0xf]  ;;  %v2128_v62 = vld [vmem:[#allocation14 + $0x280] sm:$0xf0]  ;;  %v1598_v31 = vor.u32 %v2058_v22, %v1597_v21 }
  0x44   :  { %v1770_v19 = vor.u32 %v2097_v16, %v1767_v17  ;;  %v1878_v6 = vor.u32 %v2128_v62, %v1877_v60  ;;  %v1851_v16 = vld [vmem:[#allocation14 + $0x24c] sm:$0xf0]  ;;  %v2114_v25 = vld [vmem:[#allocation14 + $0x210] sm:$0xf0] }
  0x45   :  { %236 = vmatmul.bf16.vlgmr.msra.gmra.mxu0 %v2015_v12  ;;  %v2100_v12 = vld [vmem:[#allocation14 + $0x1a0] sm:$0xf0]  ;;  %v1854_v24 = vor.u32 %v2118_v15, %v1851_v16  ;;  %v2098_v51 = vld [vmem:[#allocation14 + $0x194] sm:$0xf]  ;;  %v2143_v16 = vld [vmem:[#allocation14 + $0x2f8] sm:$0xf0] }
  0x46   :  { %446 = vmatpush.bf16.msra.mxu2 %v1514_v2  ;;  %v1766_v14 = vor.u32 %v2100_v12, %v1765_v11  ;;  %v1879_v2 = vld [vmem:[#allocation14 + $0x284] sm:$0xf0]  ;;  %v2121_v12 = vld [vmem:[#allocation14 + $0x248] sm:$0xf0]  ;;  %v1778_v63 = vor.u32 %v2098_v51, %v1775_v52  ;;  %v1857_v51 = vld [vmem:[#allocation14 + $0x238] sm:$0xf] }
  0x47   :  { %460 = vmatpush.bf16.msra.mxu3 %v1518_v4  ;;  %1216 = vmatpush.bf16.msrb.mxu1 %v1990_v18  ;;  %v1654_v4 = vor.u32 %v2072_v59, %v1653_v58  ;;  %v1882_v11 = vor.u32 %v2125_v1, %v1879_v2  ;;  %v1999_v58 = vld [vmem:[#allocation14 + $0x36c] sm:$0xf0]  ;;  %v2094_v1 = vld [vmem:[#allocation14 + $0x170] sm:$0xf0]  ;;  %v1969_v2 = vld [vmem:[#allocation14 + $0x318] sm:$0xf] }
  0x48   :  { %1202 = vmatpush.bf16.msrb.mxu0 %v1766_v14  ;;  %v1627_v14 = vld [vmem:[#allocation14 + $0x8c] sm:$0xf0] }
  0x49   :  { %v1630_v20 = vor.u32 %v2062_v13, %v1627_v14  ;;  %v2087_v13 = vld [vmem:[#allocation14 + $0x138] sm:$0xf0]  ;;  %v1941_v14 = vld [vmem:[#allocation14 + $0x2e0] sm:$0xf] }
  0x4a   :  { %447 = vmatpush.bf16.msra.mxu2 %v1506_v8  ;;  %v1625_v8 = vld [vmem:[#allocation14 + $0x70] sm:$0xf]  ;;  %v1942_v22 = vor.u32 %v2143_v16, %v1941_v14  ;;  %v1579_v16 = vld [vmem:[#allocation14 + $0x24] sm:$0xf0] }
  0x4b   :  { %461 = vmatpush.bf16.msra.mxu3 %v1510_v10  ;;  %1217 = vmatpush.bf16.msrb.mxu1 %v1962_v28  ;;  %v1849_v10 = vld [vmem:[#allocation14 + $0x230] sm:$0xf]  ;;  %v1626_v18 = vor.u32 %v2065_v9, %v1625_v8  ;;  %v2111_v28 = vld [vmem:[#allocation14 + $0x1fc] sm:$0xf]  ;;  %v1971_v8 = vld [vmem:[#allocation14 + $0x334] sm:$0xf0]  ;;  %v1746_v9 = vor.u32 %v2094_v1, %v1745_v0 }
  0x4c   :  { %1203 = vmatpush.bf16.msrb.mxu0 %v1738_v27  ;;  %v1599_v27 = vld [vmem:[#allocation14 + $0x54] sm:$0xf0]  ;;  %v2115_v1 = vld [vmem:[#allocation14 + $0x218] sm:$0xf0] }
  0x4d   :  { %v1602_v35 = vor.u32 %v2055_v26, %v1599_v27  ;;  %v1913_v27 = vld [vmem:[#allocation14 + $0x2a8] sm:$0xf] }
  0x4e   :  { %1230 = vmatpush.bf16.msrb.mxu2 %v1770_v19  ;;  %v1850_v19 = vor.u32 %v2121_v12, %v1849_v10  ;;  %v1717_v12 = vld [vmem:[#allocation14 + $0x120] sm:$0xf] }
  0x4f   :  { %1244 = vmatpush.bf16.msrb.mxu3 %v1994_v23  ;;  %v1821_v23 = vld [vmem:[#allocation14 + $0x1f8] sm:$0xf]  ;;  %v1718_v21 = vor.u32 %v2087_v13, %v1717_v12  ;;  %v2108_v13 = vld [vmem:[#allocation14 + $0x1e0] sm:$0xf0] }
  0x50   :  { %1204 = vmatpush.bf16.msrb.mxu0 %v1710_v40  ;;  %v1822_v34 = vor.u32 %v2114_v25, %v1821_v23  ;;  %v1826_v40 = vor.u32 %v2111_v28, %v1823_v29  ;;  %v2080_v25 = vld [vmem:[#allocation14 + $0x100] sm:$0xf0] }
  0x51   :  { %v2136_v28 = vld [vmem:[#allocation14 + $0x2c0] sm:$0xf0] }
  0x52   :  { %1231 = vmatpush.bf16.msrb.mxu2 %v1742_v32  ;;  %v1569_v32 = vld [vmem:[#allocation14] sm:$0xf] }
  0x53   :  { %1245 = vmatpush.bf16.msrb.mxu3 %v1966_v36  ;;  %v2051_v36 = vld [vmem:[#allocation14 + $0x18] sm:$0xf0] }
  0xc2   :  { %v237_v41 = vpop.f32.mrf.mxu0 }
  0xc3   :  { %v238_v43 = vadd.f32 %v2177_v42, %v237_v41  ;;  %v1711_v41 = vld [vmem:[#allocation14 + $0x134] sm:$0xf0] }
  0xc5   :  { %v244_v45 = vmul.f32 0.2, %v238_v43  ;;  %vm242_vm0 = vcmp.ge.f32.partialorder %v238_v43, 0.0 }
  0xc7   :  { %v246_v48 = vsel %vm242_vm0, %v238_v43, %v244_v45  ;;  %v1935_v43 = vld [vmem:[#allocation14 + $0x2f4] sm:$0xf0]  ;;  %v1714_v45 = vor.u32 %v2083_v39, %v1711_v41  ;;  %v2048_v41 = vld [vmem:[#allocation14 + $0x4] sm:$0xf] }
  0xc9   :  { %1232 = vmatpush.bf16.msrb.mxu2 %v1714_v45  ;;  %v1773_v45 = vld [vmem:[#allocation14 + $0x190] sm:$0xf] }
  0xca   :  { %v239_v44 = vpop.f32.mrf.mxu0 }
  0xcb   :  { %v240_v46 = vadd.f32 %v2177_v42, %v239_v44  ;;  %v2139_v42 = vld [vmem:[#allocation14 + $0x2dc] sm:$0xf]  ;;  %v1934_v44 = vor.u32 %v2142_v38, %v1933_v37  ;;  %v1793_v37 = vld [vmem:[#allocation14 + $0x1c0] sm:$0xf] }
  0xcc   :  { %v2107_v38 = vld [vmem:[#allocation14 + $0x1d8] sm:$0xf0] }
  0xcd   :  { %v245_v47 = vmul.f32 0.2, %v240_v46  ;;  %vm243_vm1 = vcmp.ge.f32.partialorder %v240_v46, 0.0  ;;  %1218 = vmatpush.bf16.msrb.mxu1 %v1934_v44  ;;  %1233 = vmatpush.bf16.msrb.mxu2 %v1686_v57  ;;  %v1795_v44 = vld [vmem:[#allocation14 + $0x1dc] sm:$0xf0] }
  0xce   :  { %v2154_v57 = vld [vmem:[#allocation14 + $0x354] sm:$0xf] }
  0xcf   :  { %v247_v49 = vsel %vm243_vm1, %v240_v46, %v245_v47  ;;  %v1681_v46 = vld [vmem:[#allocation14 + $0xe0] sm:$0xf]  ;;  %v2079_v47 = vld [vmem:[#allocation14 + $0xf8] sm:$0xf0] }
  0xd0   :  { %v248_v50 = vpack.c.bf16 %v247_v49, %v246_v48  ;;  %v1905_v48 = vld [vmem:[#allocation14 + $0x2a0] sm:$0xf]  ;;  %v1938_v49 = vor.u32 %v2139_v42, %v1935_v43  ;;  %v1682_v55 = vor.u32 %v2079_v47, %v1681_v46  ;;  %v2104_v43 = vld [vmem:[#allocation14 + $0x1c4] sm:$0xf]  ;;  %v2101_v46 = vld [vmem:[#allocation14 + $0x1a8] sm:$0xf0] }
  0xd1   :  { %1234 = vmatpush.bf16.msrb.mxu2 %v1658_v7  ;;  %v1571_v42 = vld [vmem:[#allocation14 + $0x1c] sm:$0xf0]  ;;  %v1798_v60 = vor.u32 %v2104_v43, %v1795_v44  ;;  %v2147_v7 = vld [vmem:[#allocation14 + $0x31c] sm:$0xf]  ;;  %v1663_v43 = vld [vmem:[#allocation14 + $0xcc] sm:$0xf0] }
  0xd2   :  { %325 = vmatmul.bf16.vlgmr.msra.gmra.mxu1 %v248_v50  ;;  %v2135_v50 = vld [vmem:[#allocation14 + $0x2b8] sm:$0xf0]  ;;  %1246 = vmatpush.bf16.msrb.mxu3 %v1938_v49  ;;  %v1997_v49 = vld [vmem:[#allocation14 + $0x350] sm:$0xf]  ;;  %v1974_v15 = vor.u32 %v2147_v7, %v1971_v8  ;;  %v1831_v7 = vld [vmem:[#allocation14 + $0x21c] sm:$0xf0] }
  0xd3   :  { %v1906_v56 = vor.u32 %v2135_v50, %v1905_v48  ;;  %1205 = vmatpush.bf16.msrb.mxu0 %v1682_v55  ;;  %v1570_v48 = vor.u32 %v2051_v36, %v1569_v32  ;;  %v2157_v50 = vld [vmem:[#allocation14 + $0x368] sm:$0xf0]  ;;  %v1794_v55 = vor.u32 %v2107_v38, %v1793_v37  ;;  %v1691_v32 = vld [vmem:[#allocation14 + $0x104] sm:$0xf0]  ;;  %v1661_v37 = vld [vmem:[#allocation14 + $0xb0] sm:$0xf] }
  0xd4   :  { %v1998_v62 = vor.u32 %v2157_v50, %v1997_v49  ;;  %v2073_v38 = vld [vmem:[#allocation14 + $0xc8] sm:$0xf0]  ;;  %v1633_v49 = vld [vmem:[#allocation14 + $0x78] sm:$0xf]  ;;  %v2066_v50 = vld [vmem:[#allocation14 + $0x90] sm:$0xf0] }
  0xd5   :  { %1219 = vmatpush.bf16.msrb.mxu1 %v1906_v56  ;;  %1235 = vmatpush.bf16.msrb.mxu2 %v1630_v20  ;;  %v1574_v56 = vor.u32 %v2048_v41, %v1571_v42  ;;  %v1943_v20 = vld [vmem:[#allocation14 + $0x2fc] sm:$0xf0]  ;;  %v2129_v41 = vld [vmem:[#allocation14 + $0x288] sm:$0xf0]  ;;  %v2070_v42 = vld [vmem:[#allocation14 + $0xb4] sm:$0xf]  ;;  %v1634_v52 = vor.u32 %v2066_v50, %v1633_v49 }
  0xd6   :  { %1247 = vmatpush.bf16.msrb.mxu3 %v1910_v61  ;;  %v1774_v61 = vor.u32 %v2101_v46, %v1773_v45  ;;  %v1666_v45 = vor.u32 %v2070_v42, %v1663_v43  ;;  %v2126_v46 = vld [vmem:[#allocation14 + $0x274] sm:$0xf]  ;;  %v2155_v42 = vld [vmem:[#allocation14 + $0x35c] sm:$0xf]  ;;  %v2007_v43 = vld [vmem:[#allocation14 + $0x374] sm:$0xf0] }
  0xd7   :  { %1206 = vmatpush.bf16.msrb.mxu0 %v1654_v4  ;;  %v2150_v4 = vld [vmem:[#allocation14 + $0x330] sm:$0xf0] }
  0xd8   :  { %v1970_v10 = vor.u32 %v2150_v4, %v1969_v2  ;;  %v2056_v2 = vld [vmem:[#allocation14 + $0x44] sm:$0xf] }
  0xd9   :  { %1220 = vmatpush.bf16.msrb.mxu1 %v1878_v6  ;;  %1236 = vmatpush.bf16.msrb.mxu2 %v1602_v35  ;;  %v1747_v6 = vld [vmem:[#allocation14 + $0x174] sm:$0xf0]  ;;  %v1915_v35 = vld [vmem:[#allocation14 + $0x2c4] sm:$0xf0] }
  0xda   :  { %1248 = vmatpush.bf16.msrb.mxu3 %v1882_v11 }
  0xdb   :  { %1207 = vmatpush.bf16.msrb.mxu0 %v1626_v18  ;;  %v1719_v18 = vld [vmem:[#allocation14 + $0x13c] sm:$0xf0] }
  0xdd   :  { %1221 = vmatpush.bf16.msrb.mxu1 %v1850_v19  ;;  %1237 = vmatpush.bf16.msrb.mxu2 %v1574_v56  ;;  %v2140_v19 = vld [vmem:[#allocation14 + $0x2e4] sm:$0xf] }
  0xde   :  { %1249 = vmatpush.bf16.msrb.mxu3 %v1854_v24  ;;  %v1689_v24 = vld [vmem:[#allocation14 + $0xe8] sm:$0xf]  ;;  %v1946_v26 = vor.u32 %v2140_v19, %v1943_v20 }
  0xdf   :  { %1208 = vmatpush.bf16.msrb.mxu0 %v1598_v31  ;;  %v1690_v29 = vor.u32 %v2080_v25, %v1689_v24  ;;  %v2077_v31 = vld [vmem:[#allocation14 + $0xec] sm:$0xf]  ;;  %v1803_v19 = vld [vmem:[#allocation14 + $0x1e4] sm:$0xf0] }
  0xe1   :  { %1222 = vmatpush.bf16.msrb.mxu1 %v1822_v34  ;;  %v1694_v34 = vor.u32 %v2077_v31, %v1691_v32 }
  0xe2   :  { %1250 = vmatpush.bf16.msrb.mxu3 %v1826_v40  ;;  %v1662_v40 = vor.u32 %v2073_v38, %v1661_v37  ;;  %v2158_v37 = vld [vmem:[#allocation14 + $0x370] sm:$0xf0]  ;;  %v2099_v38 = vld [vmem:[#allocation14 + $0x19c] sm:$0xf] }
  0xe3   :  { %1209 = vmatpush.bf16.msrb.mxu0 %v1570_v48 }
  0xe5   :  { %1223 = vmatpush.bf16.msrb.mxu1 %v1794_v55  ;;  %v1635_v55 = vld [vmem:[#allocation14 + $0x94] sm:$0xf0] }
  0xe6   :  { %1251 = vmatpush.bf16.msrb.mxu3 %v1798_v60 }
  0xe7   :  { %1258 = vmatpush.bf16.msra.mxu0 %v1774_v61  ;;  %v1605_v61 = vld [vmem:[#allocation14 + $0x40] sm:$0xf] }
  0xe9   :  { %1272 = vmatpush.bf16.msra.mxu1 %v1998_v62  ;;  %v2059_v62 = vld [vmem:[#allocation14 + $0x58] sm:$0xf0] }
  0xea   :  { %v1606_v0 = vor.u32 %v2059_v62, %v1605_v61  ;;  %v1979_v61 = vld [vmem:[#allocation14 + $0x33c] sm:$0xf0] }
  0xeb   :  { %1259 = vmatpush.bf16.msra.mxu0 %v1746_v9  ;;  %v1577_v9 = vld [vmem:[#allocation14 + $0x8] sm:$0xf] }
  0xed   :  { %1273 = vmatpush.bf16.msra.mxu1 %v1970_v10  ;;  %v2052_v10 = vld [vmem:[#allocation14 + $0x20] sm:$0xf0] }
  0xee   :  { %v1578_v12 = vor.u32 %v2052_v10, %v1577_v9  ;;  %v1951_v9 = vld [vmem:[#allocation14 + $0x304] sm:$0xf0] }
  0xef   :  { %1260 = vmatpush.bf16.msra.mxu0 %v1718_v21  ;;  %v354_v21 = vld [vmem:[#allocation13] sm:$0x3] }
  0xf0   :  { %v356_v24 = vperm.slane %v354_v21, 0  ;;  %v357_v25 = vperm.slane %v354_v21, 1  ;;  %v1923_v21 = vld [vmem:[#allocation14 + $0x2cc] sm:$0xf0] }
  0xf1   :  { %1274 = vmatpush.bf16.msra.mxu1 %v1942_v22 }
  0xf3   :  { %1261 = vmatpush.bf16.msra.mxu0 %v1690_v29 }
  0xf7   :  { %1262 = vmatpush.bf16.msra.mxu0 %v1662_v40 }
  0xfb   :  { %1263 = vmatpush.bf16.msra.mxu0 %v1634_v52  ;;  %v1753_v52 = vld [vmem:[#allocation14 + $0x160] sm:$0xf] }
  0xff   :  { %1264 = vmatpush.bf16.msra.mxu0 %v1606_v0  ;;  %v1725_v0 = vld [vmem:[#allocation14 + $0x128] sm:$0xf] }
 0x103   :  { %1265 = vmatpush.bf16.msra.mxu0 %v1578_v12  ;;  %v1697_v12 = vld [vmem:[#allocation14 + $0xf0] sm:$0xf] }
 0x14f   :  { %v326_v5 = vpop.f32.mrf.mxu1 }
 0x150   :  { %v327_v17 = vadd.f32 %v2178_v3, %v326_v5  ;;  %v2091_v5 = vld [vmem:[#allocation14 + $0x15c] sm:$0xf] }
 0x151   :  { %v1750_v11 = vor.u32 %v2091_v5, %v1747_v6  ;;  %v2112_v6 = vld [vmem:[#allocation14 + $0x204] sm:$0xf] }
 0x152   :  { %v333_v30 = vmul.f32 0.2, %v327_v17  ;;  %vm331_vm2 = vcmp.ge.f32.partialorder %v327_v17, 0.0  ;;  %v1834_v8 = vor.u32 %v2112_v6, %v1831_v7  ;;  %v2085_v6 = vld [vmem:[#allocation14 + $0x12c] sm:$0xf] }
 0x153   :  { %v1727_v7 = vld [vmem:[#allocation14 + $0x144] sm:$0xf0] }
 0x154   :  { %v335_v53 = vsel %vm331_vm2, %v327_v17, %v333_v30  ;;  %v2084_v17 = vld [vmem:[#allocation14 + $0x124] sm:$0xf]  ;;  %v1914_v30 = vor.u32 %v2136_v28, %v1913_v27 }
 0x155   :  { %v1722_v23 = vor.u32 %v2084_v17, %v1719_v18  ;;  %v2105_v17 = vld [vmem:[#allocation14 + $0x1cc] sm:$0xf] }
 0x156   :  { %1275 = vmatpush.bf16.msra.mxu1 %v1914_v30  ;;  %v1806_v20 = vor.u32 %v2105_v17, %v1803_v19  ;;  %v2137_v17 = vld [vmem:[#allocation14 + $0x2c8] sm:$0xf0]  ;;  %v1699_v19 = vld [vmem:[#allocation14 + $0x10c] sm:$0xf0] }
 0x157   :  { %v328_v33 = vpop.f32.mrf.mxu1 }
 0x158   :  { %v329_v39 = vadd.f32 %v2178_v3, %v328_v33  ;;  %v2002_v3 = vor.u32 %v2154_v57, %v1999_v58  ;;  %v2133_v33 = vld [vmem:[#allocation14 + $0x2ac] sm:$0xf]  ;;  %v2119_v58 = vld [vmem:[#allocation14 + $0x23c] sm:$0xf] }
 0x159   :  { %v1918_v36 = vor.u32 %v2133_v33, %v1915_v35  ;;  %v2102_v35 = vld [vmem:[#allocation14 + $0x1b0] sm:$0xf0] }
 0x15a   :  { %v334_v47 = vmul.f32 0.2, %v329_v39  ;;  %vm332_vm3 = vcmp.ge.f32.partialorder %v329_v39, 0.0 }
 0x15c   :  { %v336_v54 = vsel %vm332_vm3, %v329_v39, %v334_v47  ;;  %v1885_v39 = vld [vmem:[#allocation14 + $0x270] sm:$0xf] }
 0x15d   :  { %v337_v59 = vpack.c.bf16 %v336_v54, %v335_v53  ;;  %v1886_v44 = vor.u32 %v2129_v41, %v1885_v39  ;;  %v1887_v47 = vld [vmem:[#allocation14 + $0x28c] sm:$0xf0]  ;;  %v2122_v53 = vld [vmem:[#allocation14 + $0x250] sm:$0xf0]  ;;  %v2063_v54 = vld [vmem:[#allocation14 + $0x7c] sm:$0xf] }
 0x15e   :  { %v1890_v48 = vor.u32 %v2126_v46, %v1887_v47  ;;  %v1858_v56 = vor.u32 %v2122_v53, %v1857_v51  ;;  %v1638_v57 = vor.u32 %v2063_v54, %v1635_v55  ;;  %v1783_v41 = vld [vmem:[#allocation14 + $0x1b4] sm:$0xf0]  ;;  %v2095_v53 = vld [vmem:[#allocation14 + $0x178] sm:$0xf0]  ;;  %v2010_v55 = vor.u32 %v2155_v42, %v2007_v43  ;;  %v2064_v42 = vld [vmem:[#allocation14 + $0x84] sm:$0xf] }
 0x15f   :  { %448 = vmatmul.bf16.vlgmr.msra.gmra.mxu2 %v337_v59  ;;  %462 = vmatmul.bf16.vlgmr.msra.gmra.mxu3 %v337_v59  ;;  %v1859_v59 = vld [vmem:[#allocation14 + $0x254] sm:$0xf0]  ;;  %v1786_v54 = vor.u32 %v2099_v38, %v1783_v41  ;;  %v1754_v62 = vor.u32 %v2095_v53, %v1753_v52  ;;  %v2123_v41 = vld [vmem:[#allocation14 + $0x258] sm:$0xf0]  ;;  %v1643_v43 = vld [vmem:[#allocation14 + $0x9c] sm:$0xf0] }
 0x160   :  { %1286 = vmatpush.bf16.msra.mxu2 %v1778_v63  ;;  %1300 = vmatpush.bf16.msra.mxu3 %v2002_v3  ;;  %v1862_v60 = vor.u32 %v2119_v58, %v1859_v59  ;;  %v1829_v63 = vld [vmem:[#allocation14 + $0x200] sm:$0xf]  ;;  %v2092_v58 = vld [vmem:[#allocation14 + $0x164] sm:$0xf]  ;;  %v1646_v52 = vor.u32 %v2064_v42, %v1643_v43  ;;  %v1649_v42 = vld [vmem:[#allocation14 + $0x88] sm:$0xf] }
 0x161   :  { %1276 = vmatpush.bf16.msra.mxu1 %v1886_v44  ;;  %v1607_v3 = vld [vmem:[#allocation14 + $0x5c] sm:$0xf0]  ;;  %v1830_v4 = vor.u32 %v2115_v1, %v1829_v63  ;;  %v2088_v1 = vld [vmem:[#allocation14 + $0x140] sm:$0xf0] }
 0x162   :  { %v1610_v5 = vor.u32 %v2056_v2, %v1607_v3  ;;  %v1755_v59 = vld [vmem:[#allocation14 + $0x17c] sm:$0xf0]  ;;  %v1726_v10 = vor.u32 %v2088_v1, %v1725_v0  ;;  %v1809_v0 = vld [vmem:[#allocation14 + $0x1d0] sm:$0xf]  ;;  %v2068_v43 = vld [vmem:[#allocation14 + $0xa0] sm:$0xf0] }
 0x163   :  { %v1758_v2 = vor.u32 %v2092_v58, %v1755_v59  ;;  %v2113_v58 = vld [vmem:[#allocation14 + $0x20c] sm:$0xf]  ;;  %v1839_v59 = vld [vmem:[#allocation14 + $0x224] sm:$0xf0] }
 0x164   :  { %1287 = vmatpush.bf16.msra.mxu2 %v1750_v11  ;;  %1301 = vmatpush.bf16.msra.mxu3 %v1974_v15  ;;  %v1801_v11 = vld [vmem:[#allocation14 + $0x1c8] sm:$0xf]  ;;  %v2049_v15 = vld [vmem:[#allocation14 + $0xc] sm:$0xf] }
 0x165   :  { %1277 = vmatpush.bf16.msra.mxu1 %v1858_v56  ;;  %v1802_v14 = vor.u32 %v2108_v13, %v1801_v11  ;;  %v1582_v18 = vor.u32 %v2049_v15, %v1579_v16  ;;  %v1977_v56 = vld [vmem:[#allocation14 + $0x320] sm:$0xf]  ;;  %v2081_v13 = vld [vmem:[#allocation14 + $0x108] sm:$0xf0]  ;;  %v1921_v16 = vld [vmem:[#allocation14 + $0x2b0] sm:$0xf] }
 0x168   :  { %1288 = vmatpush.bf16.msra.mxu2 %v1722_v23  ;;  %1302 = vmatpush.bf16.msra.mxu3 %v1946_v26 }
 0x169   :  { %1278 = vmatpush.bf16.msra.mxu1 %v1830_v4  ;;  %v1949_v4 = vld [vmem:[#allocation14 + $0x2e8] sm:$0xf] }
 0x16c   :  { %1289 = vmatpush.bf16.msra.mxu2 %v1694_v34  ;;  %1303 = vmatpush.bf16.msra.mxu3 %v1918_v36  ;;  %v1781_v34 = vld [vmem:[#allocation14 + $0x198] sm:$0xf] }
 0x16d   :  { %1279 = vmatpush.bf16.msra.mxu1 %v1802_v14  ;;  %v2005_v36 = vld [vmem:[#allocation14 + $0x358] sm:$0xf]  ;;  %v1782_v50 = vor.u32 %v2102_v35, %v1781_v34  ;;  %v1730_v14 = vor.u32 %v2085_v6, %v1727_v7  ;;  %v2106_v6 = vld [vmem:[#allocation14 + $0x1d4] sm:$0xf]  ;;  %v1811_v7 = vld [vmem:[#allocation14 + $0x1ec] sm:$0xf0] }
 0x16e   :  { %v2006_v51 = vor.u32 %v2158_v37, %v2005_v36  ;;  %v1641_v36 = vld [vmem:[#allocation14 + $0x80] sm:$0xf]  ;;  %v2067_v37 = vld [vmem:[#allocation14 + $0x98] sm:$0xf0] }
 0x170   :  { %1290 = vmatpush.bf16.msra.mxu2 %v1666_v45  ;;  %1304 = vmatpush.bf16.msra.mxu3 %v1890_v48 }
 0x174   :  { %1291 = vmatpush.bf16.msra.mxu2 %v1638_v57  ;;  %1305 = vmatpush.bf16.msra.mxu3 %v1862_v60  ;;  %v2151_v57 = vld [vmem:[#allocation14 + $0x338] sm:$0xf0]  ;;  %v2148_v60 = vld [vmem:[#allocation14 + $0x324] sm:$0xf] }
 0x175   :  { %v1978_v63 = vor.u32 %v2151_v57, %v1977_v56  ;;  %v1982_v3 = vor.u32 %v2148_v60, %v1979_v61  ;;  %v2057_v56 = vld [vmem:[#allocation14 + $0x4c] sm:$0xf]  ;;  %v1615_v57 = vld [vmem:[#allocation14 + $0x64] sm:$0xf0] }
 0x176   :  { %v1618_v1 = vor.u32 %v2057_v56, %v1615_v57  ;;  %v1593_v56 = vld [vmem:[#allocation14 + $0x18] sm:$0xf]  ;;  %v2054_v57 = vld [vmem:[#allocation14 + $0x30] sm:$0xf0] }
 0x178   :  { %1292 = vmatpush.bf16.msra.mxu2 %v1610_v5  ;;  %1306 = vmatpush.bf16.msra.mxu3 %v1834_v8  ;;  %v2144_v5 = vld [vmem:[#allocation14 + $0x300] sm:$0xf0]  ;;  %v2141_v8 = vld [vmem:[#allocation14 + $0x2ec] sm:$0xf] }
 0x179   :  { %v1950_v11 = vor.u32 %v2144_v5, %v1949_v4  ;;  %v1954_v15 = vor.u32 %v2141_v8, %v1951_v9  ;;  %v2050_v4 = vld [vmem:[#allocation14 + $0x14] sm:$0xf]  ;;  %v1587_v5 = vld [vmem:[#allocation14 + $0x2c] sm:$0xf0]  ;;  %v1789_v8 = vld [vmem:[#allocation14 + $0x1a0] sm:$0xf] }
 0x17a   :  { %v2103_v9 = vld [vmem:[#allocation14 + $0x1b8] sm:$0xf0] }
 0x17c   :  { %1293 = vmatpush.bf16.msra.mxu2 %v1582_v18  ;;  %1307 = vmatpush.bf16.msra.mxu3 %v1806_v20  ;;  %v2078_v18 = vld [vmem:[#allocation14 + $0xf4] sm:$0xf] }
 0x17d   :  { %v2134_v20 = vld [vmem:[#allocation14 + $0x2b4] sm:$0xf] }
 0x1e2   :  { %v449_v22 = vpop.f32.mrf.mxu2  ;;  %v463_v23 = vpop.f32.mrf.mxu3 }
 0x1e3   :  { %v450_v26 = vadd.f32 %v449_v22, %v356_v24  ;;  %v464_v27 = vadd.f32 %v463_v23, %v357_v25  ;;  %v1698_v22 = vor.u32 %v2081_v13, %v1697_v12  ;;  %v1922_v23 = vor.u32 %v2137_v17, %v1921_v16 }
 0x1e4   :  { %v1790_v16 = vor.u32 %v2103_v9, %v1789_v8 }
 0x1e5   :  { %v472_v30 = vmul.f32 0.2, %v450_v26  ;;  %v473_v31 = vmul.f32 0.2, %v464_v27  ;;  %vm468_vm4 = vcmp.ge.f32.partialorder %v450_v26, 0.0  ;;  %vm469_vm5 = vcmp.ge.f32.partialorder %v464_v27, 0.0 }
 0x1e7   :  { %v476_v44 = vsel %vm468_vm4, %v450_v26, %v472_v30  ;;  %v477_v45 = vsel %vm469_vm5, %v464_v27, %v473_v31  ;;  %v1702_v26 = vor.u32 %v2078_v18, %v1699_v19  ;;  %v1926_v27 = vor.u32 %v2134_v20, %v1923_v21  ;;  %v2071_v30 = vld [vmem:[#allocation14 + $0xbc] sm:$0xf]  ;;  %v1671_v31 = vld [vmem:[#allocation14 + $0xd4] sm:$0xf0]  ;;  %v1761_v18 = vld [vmem:[#allocation14 + $0x168] sm:$0xf] }
 0x1e8   :  { %v1674_v38 = vor.u32 %v2071_v30, %v1671_v31  ;;  %v2096_v19 = vld [vmem:[#allocation14 + $0x180] sm:$0xf0]  ;;  %v1985_v20 = vld [vmem:[#allocation14 + $0x328] sm:$0xf]  ;;  %v1705_v30 = vld [vmem:[#allocation14 + $0xf8] sm:$0xf] }
 0x1e9   :  { %v2152_v21 = vld [vmem:[#allocation14 + $0x340] sm:$0xf0]  ;;  %v2082_v31 = vld [vmem:[#allocation14 + $0x110] sm:$0xf0] }
 0x1ea   :  { %v451_v28 = vpop.f32.mrf.mxu2  ;;  %v465_v29 = vpop.f32.mrf.mxu3 }
 0x1eb   :  { %v452_v32 = vadd.f32 %v451_v28, %v356_v24  ;;  %v466_v33 = vadd.f32 %v465_v29, %v357_v25  ;;  %v1669_v24 = vld [vmem:[#allocation14 + $0xb8] sm:$0xf]  ;;  %v2074_v25 = vld [vmem:[#allocation14 + $0xd0] sm:$0xf0] }
 0x1ec   :  { %v1893_v28 = vld [vmem:[#allocation14 + $0x278] sm:$0xf]  ;;  %v2130_v29 = vld [vmem:[#allocation14 + $0x290] sm:$0xf0]  ;;  %v1670_v34 = vor.u32 %v2074_v25, %v1669_v24  ;;  %v1733_v24 = vld [vmem:[#allocation14 + $0x130] sm:$0xf] }
 0x1ed   :  { %vm470_vm6 = vcmp.ge.f32.partialorder %v452_v32, 0.0  ;;  %v474_v39 = vmul.f32 0.2, %v452_v32  ;;  %vm471_vm7 = vcmp.ge.f32.partialorder %v466_v33, 0.0  ;;  %v475_v40 = vmul.f32 0.2, %v466_v33 }
 0x1ee   :  { %v1894_v35 = vor.u32 %v2130_v29, %v1893_v28  ;;  %v2089_v25 = vld [vmem:[#allocation14 + $0x148] sm:$0xf0] }
 0x1ef   :  { %v478_v46 = vsel %vm470_vm6, %v452_v32, %v474_v39  ;;  %v479_v47 = vsel %vm471_vm7, %v466_v33, %v475_v40  ;;  %v2127_v32 = vld [vmem:[#allocation14 + $0x27c] sm:$0xf]  ;;  %v1895_v33 = vld [vmem:[#allocation14 + $0x294] sm:$0xf0]  ;;  %v1865_v40 = vld [vmem:[#allocation14 + $0x240] sm:$0xf]  ;;  %v1734_v28 = vor.u32 %v2089_v25, %v1733_v24 }
 0x1f0   :  { %v2499_v48 = vpack.c.bf16 %v478_v46, %v476_v44  ;;  %v2501_v49 = vpack.c.bf16 %v479_v47, %v477_v45  ;;  %v1898_v39 = vor.u32 %v2127_v32, %v1895_v33  ;;  %v2120_v44 = vld [vmem:[#allocation14 + $0x244] sm:$0xf]  ;;  %v1867_v45 = vld [vmem:[#allocation14 + $0x25c] sm:$0xf0]  ;;  %v1642_v46 = vor.u32 %v2067_v37, %v1641_v36  ;;  %v1929_v32 = vld [vmem:[#allocation14 + $0x2b8] sm:$0xf] }
 0x1f1   :  { %v1866_v47 = vor.u32 %v2123_v41, %v1865_v40  ;;  %v1870_v53 = vor.u32 %v2120_v44, %v1867_v45  ;;  %v2138_v33 = vld [vmem:[#allocation14 + $0x2d0] sm:$0xf0]  ;;  %v1677_v36 = vld [vmem:[#allocation14 + $0xc0] sm:$0xf]  ;;  %v2075_v37 = vld [vmem:[#allocation14 + $0xd8] sm:$0xf0] }
 0x1f2   :  { %1210 = vmatmul.bf16.vlgmr.msrb.gmra.mxu0 %v2499_v48  ;;  %1224 = vmatmul.bf16.vlgmr.msrb.gmra.mxu1 %v2501_v49  ;;  %v1678_v40 = vor.u32 %v2075_v37, %v1677_v36  ;;  %v1873_v44 = vld [vmem:[#allocation14 + $0x248] sm:$0xf]  ;;  %v2124_v45 = vld [vmem:[#allocation14 + $0x260] sm:$0xf0] }
 0x1f3   :  { %1238 = vmatmul.bf16.vlgmr.msrb.gmra.mxu2 %v2499_v48  ;;  %1252 = vmatmul.bf16.vlgmr.msrb.gmra.mxu3 %v2501_v49 }
 0x1f4   :  { %1314 = vmatpush.bf16.msrb.mxu0 %v1782_v50  ;;  %1328 = vmatpush.bf16.msrb.mxu1 %v2006_v51  ;;  %v1613_v50 = vld [vmem:[#allocation14 + $0x48] sm:$0xf]  ;;  %v2060_v51 = vld [vmem:[#allocation14 + $0x60] sm:$0xf0] }
 0x1f5   :  { %1342 = vmatpush.bf16.msrb.mxu2 %v1786_v54  ;;  %1356 = vmatpush.bf16.msrb.mxu3 %v2010_v55  ;;  %v1837_v54 = vld [vmem:[#allocation14 + $0x208] sm:$0xf]  ;;  %v2116_v55 = vld [vmem:[#allocation14 + $0x220] sm:$0xf0]  ;;  %v1614_v60 = vor.u32 %v2060_v51, %v1613_v50  ;;  %v1621_v50 = vld [vmem:[#allocation14 + $0x50] sm:$0xf] }
 0x1f6   :  { %v1838_v61 = vor.u32 %v2116_v55, %v1837_v54  ;;  %v2061_v51 = vld [vmem:[#allocation14 + $0x68] sm:$0xf0] }
 0x1f7   :  { %v1622_v54 = vor.u32 %v2061_v51, %v1621_v50 }
 0x1f8   :  { %1315 = vmatpush.bf16.msrb.mxu0 %v1754_v62  ;;  %1329 = vmatpush.bf16.msrb.mxu1 %v1978_v63  ;;  %v1585_v62 = vld [vmem:[#allocation14 + $0x10] sm:$0xf]  ;;  %v2053_v63 = vld [vmem:[#allocation14 + $0x28] sm:$0xf0] }
 0x1f9   :  { %1343 = vmatpush.bf16.msrb.mxu2 %v1758_v2  ;;  %1357 = vmatpush.bf16.msrb.mxu3 %v1982_v3  ;;  %v1842_v2 = vor.u32 %v2113_v58, %v1839_v59  ;;  %v2109_v3 = vld [vmem:[#allocation14 + $0x1e8] sm:$0xf0]  ;;  %v1586_v12 = vor.u32 %v2053_v63, %v1585_v62  ;;  %v1817_v58 = vld [vmem:[#allocation14 + $0x1d8] sm:$0xf]  ;;  %v2110_v59 = vld [vmem:[#allocation14 + $0x1f0] sm:$0xf0] }
 0x1fa   :  { %v1810_v13 = vor.u32 %v2109_v3, %v1809_v0  ;;  %v2520_v62 = vld [vmem:[%s2540_s8] sm:$0xff]  ;;  %s2421_s8 = smov [#allocation16]  }
 0x1fb   :  { %v612_v63 = vperm.slane %v2520_v62, 0  ;;  %s1416_s3 = sshll.u32 %s2421_s8, 4  ;;  %s1417_s3 = int_to_ptr.vmem [resolvable:$true] %s1416_s3 }
 0x1fc   :  { %1316 = vmatpush.bf16.msrb.mxu0 %v1726_v10  ;;  %1330 = vmatpush.bf16.msrb.mxu1 %v1950_v11  ;;  %v2013_v10 = vld [vmem:[#allocation14 + $0x360] sm:$0xf]  ;;  %v2159_v11 = vld [vmem:[#allocation14 + $0x378] sm:$0xf0] }
 0x1fd   :  { %1344 = vmatpush.bf16.msrb.mxu2 %v1730_v14  ;;  %1358 = vmatpush.bf16.msrb.mxu3 %v1954_v15  ;;  %v1590_v14 = vor.u32 %v2050_v4, %v1587_v5  ;;  %v1814_v15 = vor.u32 %v2106_v6, %v1811_v7  ;;  %v2014_v17 = vor.u32 %v2159_v11, %v2013_v10  ;;  %v613_v4 = vperm.slane %v2520_v62, 1 }
 0x1fe   :  { %v614_v11 = vperm.slane %v2520_v62, 2 }
 0x200   :  { %1317 = vmatpush.bf16.msrb.mxu0 %v1698_v22  ;;  %1331 = vmatpush.bf16.msrb.mxu1 %v1922_v23  ;;  %v1762_v22 = vor.u32 %v2096_v19, %v1761_v18  ;;  %v1986_v23 = vor.u32 %v2152_v21, %v1985_v20  ;;  %v615_v20 = vperm.slane %v2520_v62, 3 }
 0x201   :  { %1345 = vmatpush.bf16.msrb.mxu2 %v1702_v26  ;;  %1359 = vmatpush.bf16.msrb.mxu3 %v1926_v27  ;;  %v1957_v26 = vld [vmem:[#allocation14 + $0x2f0] sm:$0xf]  ;;  %v2145_v27 = vld [vmem:[#allocation14 + $0x308] sm:$0xf0] }
 0x202   :  { %1266 = vmatmul.bf16.vlgmr.msra.gmra.mxu0 %v2499_v48  ;;  %1280 = vmatmul.bf16.vlgmr.msra.gmra.mxu1 %v2501_v49  ;;  %v1958_v29 = vor.u32 %v2145_v27, %v1957_v26 }
 0x203   :  { %1294 = vmatmul.bf16.vlgmr.msra.gmra.mxu2 %v2499_v48  ;;  %1308 = vmatmul.bf16.vlgmr.msra.gmra.mxu3 %v2501_v49 }
 0x204   :  { %1318 = vmatpush.bf16.msrb.mxu0 %v1670_v34  ;;  %1332 = vmatpush.bf16.msrb.mxu1 %v1894_v35  ;;  %v1706_v34 = vor.u32 %v2082_v31, %v1705_v30  ;;  %v1930_v35 = vor.u32 %v2138_v33, %v1929_v32 }
 0x205   :  { %1346 = vmatpush.bf16.msrb.mxu2 %v1674_v38  ;;  %1360 = vmatpush.bf16.msrb.mxu3 %v1898_v39  ;;  %v1901_v38 = vld [vmem:[#allocation14 + $0x280] sm:$0xf]  ;;  %v2131_v39 = vld [vmem:[#allocation14 + $0x298] sm:$0xf0] }
 0x206   :  { %v1902_v41 = vor.u32 %v2131_v39, %v1901_v38  ;;  %v617_v38 = vperm.slane %v2520_v62, 5 }
 0x208   :  { %1319 = vmatpush.bf16.msrb.mxu0 %v1642_v46  ;;  %1333 = vmatpush.bf16.msrb.mxu1 %v1866_v47  ;;  %v1650_v46 = vor.u32 %v2068_v43, %v1649_v42  ;;  %v1874_v47 = vor.u32 %v2124_v45, %v1873_v44 }
 0x209   :  { %1347 = vmatpush.bf16.msrb.mxu2 %v1646_v52  ;;  %1361 = vmatpush.bf16.msrb.mxu3 %v1870_v53  ;;  %v1845_v52 = vld [vmem:[#allocation14 + $0x210] sm:$0xf]  ;;  %v2117_v53 = vld [vmem:[#allocation14 + $0x228] sm:$0xf0] }
 0x20a   :  { %v1846_v55 = vor.u32 %v2117_v53, %v1845_v52  ;;  %v618_v53 = vperm.slane %v2520_v62, 6 }
 0x20c   :  { %1320 = vmatpush.bf16.msrb.mxu0 %v1614_v60  ;;  %1334 = vmatpush.bf16.msrb.mxu1 %v1838_v61  ;;  %v1594_v60 = vor.u32 %v2054_v57, %v1593_v56  ;;  %v1818_v61 = vor.u32 %v2110_v59, %v1817_v58 }
 0x20d   :  { %1348 = vmatpush.bf16.msrb.mxu2 %v1618_v1  ;;  %1362 = vmatpush.bf16.msrb.mxu3 %v1842_v2 }
 0x210   :  { %1321 = vmatpush.bf16.msrb.mxu0 %v1586_v12  ;;  %1335 = vmatpush.bf16.msrb.mxu1 %v1810_v13 }
 0x211   :  { %1349 = vmatpush.bf16.msrb.mxu2 %v1590_v14  ;;  %1363 = vmatpush.bf16.msrb.mxu3 %v1814_v15 }
 0x213   :  { %1322 = vmatmul.bf16.vlgmr.msrb.gmra.mxu0 %v2499_v48  ;;  %1336 = vmatmul.bf16.vlgmr.msrb.gmra.mxu1 %v2501_v49 }
 0x214   :  { %1370 = vmatpush.bf16.msra.mxu0 %v1790_v16  ;;  %1384 = vmatpush.bf16.msra.mxu1 %v2014_v17 }
 0x215   :  { %1350 = vmatmul.bf16.vlgmr.msrb.gmra.mxu2 %v2499_v48  ;;  %1364 = vmatmul.bf16.vlgmr.msrb.gmra.mxu3 %v2501_v49 }
 0x218   :  { %1371 = vmatpush.bf16.msra.mxu0 %v1762_v22  ;;  %1385 = vmatpush.bf16.msra.mxu1 %v1986_v23 }
 0x21c   :  { %1372 = vmatpush.bf16.msra.mxu0 %v1734_v28  ;;  %1386 = vmatpush.bf16.msra.mxu1 %v1958_v29  ;;  %v616_v29 = vperm.slane %v2520_v62, 4 }
 0x220   :  { %1373 = vmatpush.bf16.msra.mxu0 %v1706_v34  ;;  %1387 = vmatpush.bf16.msra.mxu1 %v1930_v35 }
 0x224   :  { %1374 = vmatpush.bf16.msra.mxu0 %v1678_v40  ;;  %1388 = vmatpush.bf16.msra.mxu1 %v1902_v41 }
 0x228   :  { %1375 = vmatpush.bf16.msra.mxu0 %v1650_v46  ;;  %1389 = vmatpush.bf16.msra.mxu1 %v1874_v47 }
 0x22c   :  { %1376 = vmatpush.bf16.msra.mxu0 %v1622_v54  ;;  %1390 = vmatpush.bf16.msra.mxu1 %v1846_v55 }
 0x230   :  { %1377 = vmatpush.bf16.msra.mxu0 %v1594_v60  ;;  %1391 = vmatpush.bf16.msra.mxu1 %v1818_v61 }
 0x233   :  { %1378 = vmatmul.bf16.vlgmr.msra.gmra.mxu0 %v2499_v48  ;;  %1392 = vmatmul.bf16.vlgmr.msra.gmra.mxu1 %v2501_v49 }
 0x26f   :  { %v1211_v0 = vpop.f32.mrf.mxu0  ;;  %v1225_v1 = vpop.f32.mrf.mxu1 }
 0x270   :  { %v1212_v2 = vadd.f32 %v1211_v0, %v612_v63 }
 0x272   :  { %v1226_v3 = vadd.f32 %v1225_v1, %v1212_v2 }
 0x274   :  { %1398 = vst [vmem:[#allocation16] sm:$0xff] %v1226_v3 }
 0x276   :  { %v1239_v5 = vpop.f32.mrf.mxu2  ;;  %v1253_v6 = vpop.f32.mrf.mxu3 }
 0x277   :  { %v1240_v7 = vadd.f32 %v1239_v5, %v613_v4  ;;  %v1213_v48 = vpop.f32.mrf.mxu0  ;;  %v1227_v8 = vpop.f32.mrf.mxu1 }
 0x278   :  { %v1214_v49 = vadd.f32 %v1213_v48, %v612_v63 }
 0x279   :  { %v1254_v9 = vadd.f32 %v1253_v6, %v1240_v7 }
 0x27a   :  { %v1228_v10 = vadd.f32 %v1227_v8, %v1214_v49 }
 0x27b   :  { %1399 = vst [vmem:[#allocation16 + $0x8] sm:$0xff] %v1254_v9 }
 0x27c   :  { %1405 = vst [vmem:[#allocation16 + $0x38] sm:$0xff] %v1228_v10 }
 0x27e   :  { %v1241_v12 = vpop.f32.mrf.mxu2  ;;  %v1255_v13 = vpop.f32.mrf.mxu3 }
 0x27f   :  { %v1242_v14 = vadd.f32 %v1241_v12, %v613_v4  ;;  %v1267_v15 = vpop.f32.mrf.mxu0  ;;  %v1281_v16 = vpop.f32.mrf.mxu1 }
 0x280   :  { %v1268_v17 = vadd.f32 %v1267_v15, %v614_v11 }
 0x281   :  { %v1256_v18 = vadd.f32 %v1255_v13, %v1242_v14 }
 0x282   :  { %v1282_v19 = vadd.f32 %v1281_v16, %v1268_v17 }
 0x283   :  { %1406 = vst [vmem:[#allocation16 + $0x40] sm:$0xff] %v1256_v18 }
 0x284   :  { %1400 = vst [vmem:[#allocation16 + $0x10] sm:$0xff] %v1282_v19 }
 0x286   :  { %v1295_v21 = vpop.f32.mrf.mxu2  ;;  %v1309_v22 = vpop.f32.mrf.mxu3 }
 0x287   :  { %v1296_v23 = vadd.f32 %v1295_v21, %v615_v20  ;;  %v1269_v24 = vpop.f32.mrf.mxu0  ;;  %v1283_v25 = vpop.f32.mrf.mxu1 }
 0x288   :  { %v1270_v26 = vadd.f32 %v1269_v24, %v614_v11 }
 0x289   :  { %v1310_v27 = vadd.f32 %v1309_v22, %v1296_v23 }
 0x28a   :  { %v1284_v28 = vadd.f32 %v1283_v25, %v1270_v26 }
 0x28b   :  { %1401 = vst [vmem:[#allocation16 + $0x18] sm:$0xff] %v1310_v27 }
 0x28c   :  { %1407 = vst [vmem:[#allocation16 + $0x48] sm:$0xff] %v1284_v28 }
 0x28e   :  { %v1297_v30 = vpop.f32.mrf.mxu2  ;;  %v1311_v31 = vpop.f32.mrf.mxu3 }
 0x28f   :  { %v1298_v32 = vadd.f32 %v1297_v30, %v615_v20 }
 0x290   :  { %v1323_v33 = vpop.f32.mrf.mxu0  ;;  %v1337_v34 = vpop.f32.mrf.mxu1 }
 0x291   :  { %v1312_v35 = vadd.f32 %v1311_v31, %v1298_v32  ;;  %v1324_v36 = vadd.f32 %v1323_v33, %v616_v29 }
 0x293   :  { %1408 = vst [vmem:[#allocation16 + $0x50] sm:$0xff] %v1312_v35  ;;  %v1338_v37 = vadd.f32 %v1337_v34, %v1324_v36 }
 0x295   :  { %1402 = vst [vmem:[#allocation16 + $0x20] sm:$0xff] %v1338_v37 }
 0x298   :  { %v1351_v39 = vpop.f32.mrf.mxu2  ;;  %v1365_v40 = vpop.f32.mrf.mxu3 }
 0x299   :  { %v1352_v41 = vadd.f32 %v1351_v39, %v617_v38  ;;  %v1325_v42 = vpop.f32.mrf.mxu0  ;;  %v1339_v45 = vpop.f32.mrf.mxu1 }
 0x29a   :  { %v1326_v43 = vadd.f32 %v1325_v42, %v616_v29 }
 0x29b   :  { %v1366_v44 = vadd.f32 %v1365_v40, %v1352_v41 }
 0x29c   :  { %v1340_v46 = vadd.f32 %v1339_v45, %v1326_v43 }
 0x29d   :  { %1403 = vst [vmem:[#allocation16 + $0x28] sm:$0xff] %v1366_v44 }
 0x29e   :  { %1409 = vst [vmem:[#allocation16 + $0x58] sm:$0xff] %v1340_v46 }
 0x2a0   :  { %v1353_v47 = vpop.f32.mrf.mxu2  ;;  %v1367_v51 = vpop.f32.mrf.mxu3 }
 0x2a1   :  { %v1354_v50 = vadd.f32 %v1353_v47, %v617_v38 }
 0x2a3   :  { %v1368_v52 = vadd.f32 %v1367_v51, %v1354_v50 }
 0x2a5   :  { %1410 = vst [vmem:[#allocation16 + $0x60] sm:$0xff] %v1368_v52 }
 0x2b0   :  { %v1379_v54 = vpop.f32.mrf.mxu0  ;;  %v1393_v55 = vpop.f32.mrf.mxu1 }
 0x2b1   :  { %v1380_v56 = vadd.f32 %v1379_v54, %v618_v53 }
 0x2b3   :  { %v1394_v57 = vadd.f32 %v1393_v55, %v1380_v56 }
 0x2b5   :  { %1404 = vst [vmem:[#allocation16 + $0x30] sm:$0xff] %v1394_v57 }
 0x2b8   :  { %v1381_v58 = vpop.f32.mrf.mxu0  ;;  %v1395_v60 = vpop.f32.mrf.mxu1 }
 0x2b9   :  { %v1382_v59 = vadd.f32 %v1381_v58, %v618_v53 }
 0x2bb   :  { %v1396_v61 = vadd.f32 %v1395_v60, %v1382_v59 }
 0x2bd   :  { %1411 = vst [vmem:[#allocation16 + $0x68] sm:$0xff] %v1396_v61 }
 0x2be   :  { %1424 = dma.vmem_to_hbm [thread:$0]  %s1417_s3, 1792, %s1419_s29, [#allocation4], %s2422_s30, %s2422_s30, %s2423_s10  }
 0x2bf   :  { %2405 = dma.done.wait [#allocation4], 1792  }
 0x2c0   :  { %2406 = vsyncadd [#allocation4], 4294965504 }
 0x2c1   :  { %1429 = vsyncpa [#allocation3], 1 }
 0x2c2   :  { %1430 = vsyncpa [#allocation6], 1 }
 0x2c3   :  { %1431 = vsyncpa [#allocation9], 1 }
 0x2c4   :  { %1432 = vsyncpa [#allocation12], 1 }
 0x2c5   :  { %1433 = vsyncpa [#allocation15], 1 }
 0x2c6   :  { %1434 = vsyncpa [#allocation4], 1 }

</bundles_post_ra>
